<compile_context>
chip_gen: v6e
topology: v6e:2x2x1
jax: 0.10.0
libtpu: 0.0.40
codegen_flags: <defaults>
</compile_context>

<pallas_src>
import math
import functools

import jax
import jax.numpy as jnp
from jax.experimental import pallas as pl
from jax.experimental.pallas import tpu as pltpu

_HALF_LOG_2PI = 0.5 * math.log(2.0 * math.pi)
_LOG_2 = math.log(2.0)


def _round_up(x, m):
    return ((x + m - 1) // m) * m


def actor_kernel(num_layer, obs_dim, act_dim, seg, act_limit, min_log, max_log,
                 training, compute_dtype, *refs):
    """refs = obs, w_hidden_stack, b_hidden_stack, w_head, b_head, [eps], out_packed."""
    if training:
        obs_ref, wh_ref, bh_ref, whd_ref, bhd_ref, eps_ref, out_ref = refs
    else:
        obs_ref, wh_ref, bh_ref, whd_ref, bhd_ref, out_ref = refs
        eps_ref = None

    # ---- MLP: x @ W + b, ReLU.  Feature lanes padded up to A stay exactly zero
    #      (zero weight columns + zero bias + relu), so stacked (A, A) weights are safe.
    x = obs_ref[...].astype(compute_dtype)                       # (bt, obs_dim)
    for l in range(num_layer):
        w = wh_ref[l]                                            # (A, A), static index
        if l == 0 and obs_dim != w.shape[0]:
            w = w[:obs_dim, :]                                   # first layer K = obs_dim
        x = jnp.dot(x, w, preferred_element_type=jnp.float32)
        x = jnp.maximum(x + bh_ref[l], 0.0).astype(compute_dtype)   # (bt, A)

    # Head packed 256 wide: mu in lanes [0:act_dim), log-sigma in lanes [128:128+act_dim)
    # -> the split below is a plain value slice, no relayout.
    param = jnp.dot(x, whd_ref[...], preferred_element_type=jnp.float32) + bhd_ref[...]

    mu = param[:, 0:act_dim]                                     # (bt, act_dim)
    omega = param[:, 128:128 + act_dim]

    log_sig = jnp.clip(omega, min_log, max_log)
    sigma = jnp.exp(log_sig) + 1e-6
    log_sigma = jnp.log(sigma)        # true log-scale -> matches Normal(mu, sigma).log_prob

    if training:
        eps = eps_ref[...]                                       # (bt, act_dim), unpadded
        unsquashed = mu + sigma * eps                            # rsample; (u-mu)/sigma == eps
        logp_u = -log_sigma - _HALF_LOG_2PI - 0.5 * jnp.square(eps)
    else:
        unsquashed = mu                                          # dist.mean
        logp_u = -log_sigma - _HALF_LOG_2PI

    squashed = jnp.tanh(unsquashed)
    action = squashed * act_limit

    # TODO(synk): calc_entropy is not defined in the provided source; this is the
    # standard SAC tanh-squashed-Gaussian estimate: entropy = -sum_a log p(action),
    # using the stable log(1 - tanh(u)^2) = 2*(log2 - u - softplus(-2u)) plus the
    # act_limit change-of-variables term.  (log(1+x) kept instead of log1p for
    # Mosaic-lowering safety; the precision delta is below f32 eps in log_jac.)
    two_u = 2.0 * unsquashed
    softplus_m2u = jnp.maximum(-two_u, 0.0) + jnp.log(1.0 + jnp.exp(-jnp.abs(two_u)))
    log_jac = 2.0 * (_LOG_2 - unsquashed - softplus_m2u) + math.log(act_limit)
    entropy = -jnp.sum(logp_u - log_jac, axis=-1, keepdims=True)  # (bt, 1)

    # ---- one lane-packed output tile per block (block last dim is 128/512-lane dense;
    #      the narrow in-tile stores are cheap masked vst's, writeback DMA is full width).
    out_ref[...] = jnp.zeros_like(out_ref)
    out_ref[:, 0:act_dim] = mu
    out_ref[:, seg:seg + act_dim] = sigma
    out_ref[:, 2 * seg:2 * seg + act_dim] = action
    out_ref[:, 3 * seg:3 * seg + 1] = entropy


def pack_actor_params(params, obs_dim, hid_dim, act_dim, num_layer,
                      compute_dtype=jnp.float32):
    """Pack ONCE at init (not per call): stacked hidden weights/biases + 256-wide head."""
    assert act_dim <= 128, "head packing assumes act_dim <= 128"
    A = _round_up(max(obs_dim, hid_dim), 8)
    w_hidden = jnp.zeros((num_layer, A, A), compute_dtype)
    b_hidden = jnp.zeros((num_layer, 1, A), jnp.float32)
    for l, (w, b) in enumerate(params["hidden"]):
        in_f, out_f = w.shape
        w_hidden = w_hidden.at[l, :in_f, :out_f].set(w.astype(compute_dtype))
        b_hidden = b_hidden.at[l, 0, :out_f].set(b.reshape(-1).astype(jnp.float32))
    w_out, b_out = params["out"]
    b_out = b_out.reshape(-1).astype(jnp.float32)
    w_head = jnp.zeros((A, 256), compute_dtype)
    b_head = jnp.zeros((1, 256), jnp.float32)
    w_head = w_head.at[:hid_dim, :act_dim].set(w_out[:, :act_dim].astype(compute_dtype))
    w_head = w_head.at[:hid_dim, 128:128 + act_dim].set(
        w_out[:, act_dim:].astype(compute_dtype))
    b_head = b_head.at[0, :act_dim].set(b_out[:act_dim])
    b_head = b_head.at[0, 128:128 + act_dim].set(b_out[act_dim:])
    return dict(w_hidden=w_hidden, b_hidden=b_hidden, w_head=w_head, b_head=b_head,
                obs_dim=obs_dim, hid_dim=hid_dim, act_dim=act_dim,
                num_layer=num_layer, A=A, compute_dtype=compute_dtype)


def _auto_block_b(obs_dim, act_dim, out_w, training, compute_dtype,
                  vmem_budget_bytes=6 << 20):
    """Largest batch tile whose double-buffered per-block footprint fits a conservative
    scoped-VMEM budget (safe even for v5e's 16 MiB default; weights are a few 10s of KiB)."""
    per_row = obs_dim * jnp.dtype(compute_dtype).itemsize + out_w * 4
    if training:
        per_row += act_dim * 4
    per_row *= 2                                   # double buffering
    cap = max(64, (vmem_budget_bytes // per_row) // 8 * 8)
    return int(min(2048, cap))


def _select_bt(B, block_b):
    if B > block_b:
        return block_b                             # grid >= 2, tail block may be partial
    if B >= 256:
        return _round_up(pl.cdiv(B, 2), 8)         # >=2 "parallel" steps for v7x's 2 TCs
    return B                                       # single block, equal to full batch dim


def actor_forward(obs, packed, *, act_limit, min_log, max_log, eps=None,
                  training=False, block_b=None):
    """Returns (mu, sigma, action_hat, entropy); mu/sigma stand in for Normal(mu, sigma)."""
    obs_dim, act_dim = packed["obs_dim"], packed["act_dim"]
    num_layer, A = packed["num_layer"], packed["A"]
    compute_dtype = packed["compute_dtype"]
    B = obs.shape[0]
    assert obs.shape[1] == obs_dim

    # Packed output layout: mu | sigma | action | entropy at lane offsets 0, seg, 2seg, 3seg.
    if 3 * act_dim + 1 <= 128:
        seg, out_w = act_dim, 128
    else:
        seg, out_w = 128, 512

    if block_b is None:
        block_b = _auto_block_b(obs_dim, act_dim, out_w, training, compute_dtype)
    bt = _select_bt(B, block_b)
    grid = (pl.cdiv(B, bt),)

    inputs = [obs, packed["w_hidden"], packed["b_hidden"],
              packed["w_head"], packed["b_head"]]
    in_specs = [
        pl.BlockSpec((bt, obs_dim), lambda i: (i, 0)),
        pl.BlockSpec((num_layer, A, A), lambda i: (0, 0, 0)),
        pl.BlockSpec((num_layer, 1, A), lambda i: (0, 0, 0)),
        pl.BlockSpec((A, 256), lambda i: (0, 0)),
        pl.BlockSpec((1, 256), lambda i: (0, 0)),
    ]
    if training:
        assert eps is not None and eps.shape == (B, act_dim), \
            "training=True needs rsample noise eps of shape (B, act_dim)"
        inputs.append(eps.astype(jnp.float32))
        in_specs.append(pl.BlockSpec((bt, act_dim), lambda i: (i, 0)))

    kernel = functools.partial(
        actor_kernel, num_layer, obs_dim, act_dim, seg,
        float(act_limit), float(min_log), float(max_log), training, compute_dtype)

    out = pl.pallas_call(
        kernel,
        out_shape=jax.ShapeDtypeStruct((B, out_w), jnp.float32),
        grid=grid,
        in_specs=in_specs,
        out_specs=pl.BlockSpec((bt, out_w), lambda i: (i, 0)),
        compiler_params=pltpu.CompilerParams(dimension_semantics=("parallel",)),
    )(*inputs)

    mu = out[:, 0:act_dim]
    sigma = out[:, seg:seg + act_dim]
    action_hat = out[:, 2 * seg:2 * seg + act_dim]
    entropy = out[:, 3 * seg:3 * seg + 1]
    return mu, sigma, action_hat, entropy


def actor_reference(obs, params, eps, *, act_limit, min_log, max_log, training):
    """Pure-JAX reference of the same forward (for correctness checking)."""
    x = obs
    for w, b in params["hidden"]:
        x = jnp.maximum(x @ w + b, 0.0)
    w_out, b_out = params["out"]
    p = x @ w_out + b_out
    act_dim = w_out.shape[1] // 2
    mu, omega = p[:, :act_dim], p[:, act_dim:]
    log_sig = jnp.clip(omega, min_log, max_log)
    sigma = jnp.exp(log_sig) + 1e-6
    log_sigma = jnp.log(sigma)
    u = mu + sigma * eps if training else mu
    z = (u - mu) / sigma
    logp = -log_sigma - _HALF_LOG_2PI - 0.5 * z * z
    squashed = jnp.tanh(u)
    action = squashed * act_limit
    sp = jnp.maximum(-2.0 * u, 0.0) + jnp.log(1.0 + jnp.exp(-jnp.abs(2.0 * u)))
    log_jac = 2.0 * (_LOG_2 - u - sp) + math.log(act_limit)
    entropy = -jnp.sum(logp - log_jac, axis=-1, keepdims=True)
    return mu, sigma, action, entropy


def init_actor_params(key, obs_dim, hid_dim, act_dim, num_layer):
    """Matches the PyTorch init: hidden Linear ~ U(-1/sqrt(hid), 1/sqrt(hid)),
    output Linear ~ U(-0.003, 0.003), biases 0.  Weights stored (in, out)."""
    hidden = []
    unit = obs_dim
    for _ in range(num_layer):
        key, sub = jax.random.split(key)
        bound = 1.0 / math.sqrt(hid_dim)
        w = jax.random.uniform(sub, (unit, hid_dim), jnp.float32, -bound, bound)
        b = jnp.zeros((1, hid_dim), jnp.float32)
        hidden.append((w, b))
        unit = hid_dim
    key, sub = jax.random.split(key)
    w_out = jax.random.uniform(sub, (unit, act_dim * 2), jnp.float32, -0.003, 0.003)
    b_out = jnp.zeros((1, act_dim * 2), jnp.float32)
    return {"hidden": hidden, "out": (w_out, b_out)}


if __name__ == "__main__":
    B, obs_dim, hid_dim, act_dim, num_layer = 8, 16, 32, 4, 2
    act_limit, min_log, max_log = 1.0, -20.0, 2.0

    root = jax.random.PRNGKey(0)
    k_param, k_obs, k_eps = jax.random.split(root, 3)
    params = init_actor_params(k_param, obs_dim, hid_dim, act_dim, num_layer)
    # Pack once (NOT per call) — reused by every forward below.
    packed = pack_actor_params(params, obs_dim, hid_dim, act_dim, num_layer)

    obs = jax.random.normal(k_obs, (B, obs_dim), jnp.float32)
    eps = jax.random.normal(k_eps, (B, act_dim), jnp.float32)

    # --- eval variant (dist.mean path, no eps stream) ---
    mu, sigma, action_hat, entropy = actor_forward(
        obs, packed, act_limit=act_limit, min_log=min_log, max_log=max_log,
        training=False)
    jax.block_until_ready((mu, sigma, action_hat, entropy))
    assert mu.shape == (B, act_dim) and sigma.shape == (B, act_dim)
    assert action_hat.shape == (B, act_dim) and entropy.shape == (B, 1)
    ref = actor_reference(obs, params, None, act_limit=act_limit,
                          min_log=min_log, max_log=max_log, training=False)
    for got, want in zip((mu, sigma, action_hat, entropy), ref):
        assert bool(jnp.all(jnp.isfinite(got)))
        assert bool(jnp.allclose(got, want, rtol=1e-4, atol=1e-4))

    # --- training variant (rsample path, eps passed unpadded as (B, act_dim)) ---
    out_t = actor_forward(obs, packed, eps=eps, act_limit=act_limit,
                          min_log=min_log, max_log=max_log, training=True)
    jax.block_until_ready(out_t)
    ref_t = actor_reference(obs, params, eps, act_limit=act_limit,
                            min_log=min_log, max_log=max_log, training=True)
    for got, want in zip(out_t, ref_t):
        assert bool(jnp.all(jnp.isfinite(got)))
        assert bool(jnp.allclose(got, want, rtol=1e-4, atol=1e-4))

    # --- larger, non-power-of-two batch: exercises the pl.cdiv parallel grid with a
    #     partial tail block (2 grid steps -> both v7x TensorCores) ---
    B2 = 1000
    obs2 = jax.random.normal(k_obs, (B2, obs_dim), jnp.float32)
    eps2 = jax.random.normal(k_eps, (B2, act_dim), jnp.float32)
    out2 = actor_forward(obs2, packed, eps=eps2, act_limit=act_limit,
                         min_log=min_log, max_log=max_log, training=True)
    jax.block_until_ready(out2)
    ref2 = actor_reference(obs2, params, eps2, act_limit=act_limit,
                           min_log=min_log, max_log=max_log, training=True)
    assert out2[2].shape == (B2, act_dim) and out2[3].shape == (B2, 1)
    for got, want in zip(out2, ref2):
        assert bool(jnp.all(jnp.isfinite(got)))
        assert bool(jnp.allclose(got, want, rtol=1e-4, atol=1e-4))

    print("KERNEL_OK")
</pallas_src>

<mosaic_0001>
module attributes {stable_mosaic.version = 11 : i64} {
  func.func @actor_kernel(%arg0: i32, %arg1: memref<8x16xf32, #tpu.memory_space<vmem>>, %arg2: memref<2x32x32xf32, #tpu.memory_space<vmem>>, %arg3: memref<2x1x32xf32, #tpu.memory_space<vmem>>, %arg4: memref<32x256xf32, #tpu.memory_space<vmem>>, %arg5: memref<1x256xf32, #tpu.memory_space<vmem>>, %arg6: memref<8x128xf32, #tpu.memory_space<vmem>>) attributes {dimension_semantics = [#tpu.dimension_semantics<parallel>], iteration_bounds = array<i64: 1>, scalar_prefetch = 0 : i64, scratch_operands = 0 : i64, tpu.core_type = #tpu.core_type<tc>, window_params = [{transform_indices = @transform_0, window_bounds = array<i64: 8, 16>}, {pipeline_mode = #tpu.pipeline_mode<synchronous>, transform_indices = @transform_1, window_bounds = array<i64: 2, 32, 32>}, {pipeline_mode = #tpu.pipeline_mode<synchronous>, transform_indices = @transform_2, window_bounds = array<i64: 2, 1, 32>}, {pipeline_mode = #tpu.pipeline_mode<synchronous>, transform_indices = @transform_3, window_bounds = array<i64: 32, 256>}, {pipeline_mode = #tpu.pipeline_mode<synchronous>, transform_indices = @transform_4, window_bounds = array<i64: 1, 256>}, {transform_indices = @transform_5, window_bounds = array<i64: 8, 128>}]} {
    %c0 = arith.constant 0 : index
    %c0_0 = arith.constant 0 : index
    %0 = vector.load %arg1[%c0, %c0_0] : memref<8x16xf32, #tpu.memory_space<vmem>>, vector<8x16xf32>
    %c0_1 = arith.constant 0 : index
    %c0_2 = arith.constant 0 : index
    %c0_3 = arith.constant 0 : index
    %1 = vector.load %arg2[%c0_1, %c0_2, %c0_3] : memref<2x32x32xf32, #tpu.memory_space<vmem>>, vector<1x32x32xf32>
    %2 = vector.shape_cast %1 : vector<1x32x32xf32> to vector<32x32xf32>
    %3 = vector.extract_strided_slice %2 {offsets = [0, 0], sizes = [16, 32], strides = [1, 1]} : vector<32x32xf32> to vector<16x32xf32>
    %cst = arith.constant dense<0.000000e+00> : vector<8x32xf32>
    %4 = tpu.matmul %0, %3, %cst {dimension_numbers = #tpu.dot_dimension_numbers<[1], [0], [0], [1], [0, 0, 1, 1], [], []>} : vector<8x16xf32>, vector<16x32xf32>, vector<8x32xf32> -> vector<8x32xf32>
    %c0_4 = arith.constant 0 : index
    %c0_5 = arith.constant 0 : index
    %c0_6 = arith.constant 0 : index
    %5 = vector.load %arg3[%c0_4, %c0_5, %c0_6] : memref<2x1x32xf32, #tpu.memory_space<vmem>>, vector<1x1x32xf32>
    %6 = vector.shape_cast %5 : vector<1x1x32xf32> to vector<1x32xf32>
    %7 = vector.broadcast %6 : vector<1x32xf32> to vector<8x32xf32>
    %8 = arith.addf %4, %7 : vector<8x32xf32>
    %cst_7 = arith.constant 0.000000e+00 : f32
    %9 = vector.broadcast %cst_7 : f32 to vector<8x32xf32>
    %10 = arith.maximumf %8, %9 : vector<8x32xf32>
    %c1 = arith.constant 1 : index
    %c0_8 = arith.constant 0 : index
    %c0_9 = arith.constant 0 : index
    %11 = vector.load %arg2[%c1, %c0_8, %c0_9] : memref<2x32x32xf32, #tpu.memory_space<vmem>>, vector<1x32x32xf32>
    %12 = vector.shape_cast %11 : vector<1x32x32xf32> to vector<32x32xf32>
    %cst_10 = arith.constant dense<0.000000e+00> : vector<8x32xf32>
    %13 = tpu.matmul %10, %12, %cst_10 {dimension_numbers = #tpu.dot_dimension_numbers<[1], [0], [0], [1], [0, 0, 1, 1], [], []>} : vector<8x32xf32>, vector<32x32xf32>, vector<8x32xf32> -> vector<8x32xf32>
    %c1_11 = arith.constant 1 : index
    %c0_12 = arith.constant 0 : index
    %c0_13 = arith.constant 0 : index
    %14 = vector.load %arg3[%c1_11, %c0_12, %c0_13] : memref<2x1x32xf32, #tpu.memory_space<vmem>>, vector<1x1x32xf32>
    %15 = vector.shape_cast %14 : vector<1x1x32xf32> to vector<1x32xf32>
    %16 = vector.broadcast %15 : vector<1x32xf32> to vector<8x32xf32>
    %17 = arith.addf %13, %16 : vector<8x32xf32>
    %cst_14 = arith.constant 0.000000e+00 : f32
    %18 = vector.broadcast %cst_14 : f32 to vector<8x32xf32>
    %19 = arith.maximumf %17, %18 : vector<8x32xf32>
    %c0_15 = arith.constant 0 : index
    %c0_16 = arith.constant 0 : index
    %20 = vector.load %arg4[%c0_15, %c0_16] : memref<32x256xf32, #tpu.memory_space<vmem>>, vector<32x256xf32>
    %cst_17 = arith.constant dense<0.000000e+00> : vector<8x256xf32>
    %21 = tpu.matmul %19, %20, %cst_17 {dimension_numbers = #tpu.dot_dimension_numbers<[1], [0], [0], [1], [0, 0, 1, 1], [], []>} : vector<8x32xf32>, vector<32x256xf32>, vector<8x256xf32> -> vector<8x256xf32>
    %c0_18 = arith.constant 0 : index
    %c0_19 = arith.constant 0 : index
    %22 = vector.load %arg5[%c0_18, %c0_19] : memref<1x256xf32, #tpu.memory_space<vmem>>, vector<1x256xf32>
    %23 = vector.broadcast %22 : vector<1x256xf32> to vector<8x256xf32>
    %24 = arith.addf %21, %23 : vector<8x256xf32>
    %25 = vector.extract_strided_slice %24 {offsets = [0, 0], sizes = [8, 4], strides = [1, 1]} : vector<8x256xf32> to vector<8x4xf32>
    %26 = vector.extract_strided_slice %24 {offsets = [0, 128], sizes = [8, 4], strides = [1, 1]} : vector<8x256xf32> to vector<8x4xf32>
    %cst_20 = arith.constant -2.000000e+01 : f32
    %cst_21 = arith.constant 2.000000e+00 : f32
    %27 = vector.broadcast %cst_20 : f32 to vector<8x4xf32>
    %28 = arith.maximumf %27, %26 : vector<8x4xf32>
    %29 = vector.broadcast %cst_21 : f32 to vector<8x4xf32>
    %30 = arith.minimumf %29, %28 : vector<8x4xf32>
    %31 = math.exp %30 : vector<8x4xf32>
    %cst_22 = arith.constant 9.99999997E-7 : f32
    %32 = vector.broadcast %cst_22 : f32 to vector<8x4xf32>
    %33 = arith.addf %31, %32 : vector<8x4xf32>
    %34 = math.log %33 : vector<8x4xf32>
    %cst_23 = arith.constant 0.000000e+00 : f32
    %35 = vector.broadcast %cst_23 : f32 to vector<8x4xf32>
    %36 = arith.subf %35, %34 : vector<8x4xf32>
    %cst_24 = arith.constant 0.918938517 : f32
    %37 = vector.broadcast %cst_24 : f32 to vector<8x4xf32>
    %38 = arith.subf %36, %37 : vector<8x4xf32>
    %39 = math.tanh %25 : vector<8x4xf32>
    %cst_25 = arith.constant 1.000000e+00 : f32
    %40 = vector.broadcast %cst_25 : f32 to vector<8x4xf32>
    %41 = arith.mulf %39, %40 : vector<8x4xf32>
    %cst_26 = arith.constant 2.000000e+00 : f32
    %42 = vector.broadcast %cst_26 : f32 to vector<8x4xf32>
    %43 = arith.mulf %42, %25 : vector<8x4xf32>
    %cst_27 = arith.constant 0.000000e+00 : f32
    %44 = vector.broadcast %cst_27 : f32 to vector<8x4xf32>
    %45 = arith.subf %44, %43 : vector<8x4xf32>
    %cst_28 = arith.constant 0.000000e+00 : f32
    %46 = vector.broadcast %cst_28 : f32 to vector<8x4xf32>
    %47 = arith.maximumf %45, %46 : vector<8x4xf32>
    %48 = math.absf %43 : vector<8x4xf32>
    %cst_29 = arith.constant 0.000000e+00 : f32
    %49 = vector.broadcast %cst_29 : f32 to vector<8x4xf32>
    %50 = arith.subf %49, %48 : vector<8x4xf32>
    %51 = math.exp %50 : vector<8x4xf32>
    %cst_30 = arith.constant 1.000000e+00 : f32
    %52 = vector.broadcast %cst_30 : f32 to vector<8x4xf32>
    %53 = arith.addf %52, %51 : vector<8x4xf32>
    %54 = math.log %53 : vector<8x4xf32>
    %55 = arith.addf %47, %54 : vector<8x4xf32>
    %cst_31 = arith.constant 0.693147182 : f32
    %56 = vector.broadcast %cst_31 : f32 to vector<8x4xf32>
    %57 = arith.subf %56, %25 : vector<8x4xf32>
    %58 = arith.subf %57, %55 : vector<8x4xf32>
    %cst_32 = arith.constant 2.000000e+00 : f32
    %59 = vector.broadcast %cst_32 : f32 to vector<8x4xf32>
    %60 = arith.mulf %59, %58 : vector<8x4xf32>
    %cst_33 = arith.constant 0.000000e+00 : f32
    %61 = vector.broadcast %cst_33 : f32 to vector<8x4xf32>
    %62 = arith.addf %60, %61 : vector<8x4xf32>
    %63 = arith.subf %38, %62 : vector<8x4xf32>
    %cst_34 = arith.constant dense<0.000000e+00> : vector<8xf32>
    %64 = vector.multi_reduction <add>, %63, %cst_34 [1] : vector<8x4xf32> to vector<8xf32>
    %65 = vector.shape_cast %64 : vector<8xf32> to vector<8x1xf32>
    %cst_35 = arith.constant 0.000000e+00 : f32
    %66 = vector.broadcast %cst_35 : f32 to vector<8x1xf32>
    %67 = arith.subf %66, %65 : vector<8x1xf32>
    %cst_36 = arith.constant 0.000000e+00 : f32
    %68 = vector.broadcast %cst_36 : f32 to vector<8x128xf32>
    %c0_37 = arith.constant 0 : index
    %c0_38 = arith.constant 0 : index
    %69 = vector.load %arg6[%c0_37, %c0_38] : memref<8x128xf32, #tpu.memory_space<vmem>>, vector<8x128xf32>
    tpu.vector_store %arg6[%c0_37, %c0_38], %68 {strides = array<i32>} : memref<8x128xf32, #tpu.memory_space<vmem>>, vector<8x128xf32>,
    %c0_39 = arith.constant 0 : index
    %c0_40 = arith.constant 0 : index
    %70 = vector.load %arg6[%c0_39, %c0_40] : memref<8x128xf32, #tpu.memory_space<vmem>>, vector<8x4xf32>
    tpu.vector_store %arg6[%c0_39, %c0_40], %25 {strides = array<i32>} : memref<8x128xf32, #tpu.memory_space<vmem>>, vector<8x4xf32>,
    %c0_41 = arith.constant 0 : index
    %c4 = arith.constant 4 : index
    %71 = vector.load %arg6[%c0_41, %c4] : memref<8x128xf32, #tpu.memory_space<vmem>>, vector<8x4xf32>
    tpu.vector_store %arg6[%c0_41, %c4], %33 {strides = array<i32>} : memref<8x128xf32, #tpu.memory_space<vmem>>, vector<8x4xf32>,
    %c0_42 = arith.constant 0 : index
    %c8 = arith.constant 8 : index
    %72 = vector.load %arg6[%c0_42, %c8] : memref<8x128xf32, #tpu.memory_space<vmem>>, vector<8x4xf32>
    tpu.vector_store %arg6[%c0_42, %c8], %41 {strides = array<i32>} : memref<8x128xf32, #tpu.memory_space<vmem>>, vector<8x4xf32>,
    %c0_43 = arith.constant 0 : index
    %c12 = arith.constant 12 : index
    %73 = vector.load %arg6[%c0_43, %c12] : memref<8x128xf32, #tpu.memory_space<vmem>>, vector<8x1xf32>
    tpu.vector_store %arg6[%c0_43, %c12], %67 {strides = array<i32>} : memref<8x128xf32, #tpu.memory_space<vmem>>, vector<8x1xf32>,
    return
  }
  func.func @transform_0(%arg0: i32) -> (i32, i32) {
    %c0_i32 = arith.constant 0 : i32
    %c0_i32_0 = arith.constant 0 : i32
    return %arg0, %c0_i32 : i32, i32
  }
  func.func @transform_1(%arg0: i32) -> (i32, i32, i32) {
    %c0_i32 = arith.constant 0 : i32
    %c0_i32_0 = arith.constant 0 : i32
    %c0_i32_1 = arith.constant 0 : i32
    %c0_i32_2 = arith.constant 0 : i32
    return %c0_i32, %c0_i32_0, %c0_i32_1 : i32, i32, i32
  }
  func.func @transform_2(%arg0: i32) -> (i32, i32, i32) {
    %c0_i32 = arith.constant 0 : i32
    %c0_i32_0 = arith.constant 0 : i32
    %c0_i32_1 = arith.constant 0 : i32
    %c0_i32_2 = arith.constant 0 : i32
    return %c0_i32, %c0_i32_0, %c0_i32_1 : i32, i32, i32
  }
  func.func @transform_3(%arg0: i32) -> (i32, i32) {
    %c0_i32 = arith.constant 0 : i32
    %c0_i32_0 = arith.constant 0 : i32
    %c0_i32_1 = arith.constant 0 : i32
    return %c0_i32, %c0_i32_0 : i32, i32
  }
  func.func @transform_4(%arg0: i32) -> (i32, i32) {
    %c0_i32 = arith.constant 0 : i32
    %c0_i32_0 = arith.constant 0 : i32
    %c0_i32_1 = arith.constant 0 : i32
    return %c0_i32, %c0_i32_0 : i32, i32
  }
  func.func @transform_5(%arg0: i32) -> (i32, i32) {
    %c0_i32 = arith.constant 0 : i32
    %c0_i32_0 = arith.constant 0 : i32
    return %arg0, %c0_i32 : i32, i32
  }
}

</mosaic_0001>

<bundles_post_ra>
// kernel: tpu_custom_call.1
= control target key start
LH: loop header
LB: loop body
LE: loop exit
PB: predicated region body
PF: predicated region fallthrough
CT: control target
= control target key end

     0   :  { %10 = vsyncpa [#allocation3], 0  ;;  %s598_s0 = inlined_call_operand.hbm [shape: f32[8,16], index: 0, kind: input, shape index: {}]   ;;  %s599_s1 = inlined_call_operand.hbm [shape: f32[2,32,32], index: 1, kind: input, shape index: {}]   ;;  %s600_s2 = inlined_call_operand.vmem [shape: f32[2,1,32], index: 2, kind: input, shape index: {}]   ;;  %s601_s3 = inlined_call_operand.hbm [shape: f32[32,256], index: 3, kind: input, shape index: {}]   ;;  %s602_s4 = inlined_call_operand.vmem [shape: f32[1,256], index: 4, kind: input, shape index: {}]   ;;  %s603_s5 = inlined_call_operand.hbm [shape: f32[8,128], index: 5, kind: output, shape index: {}]  }
   0x1   :  { %11 = vsyncpa [#allocation6], 0 }
   0x2   :  { %12 = vsyncpa [#allocation4], 0  ;;  %s530_s18 = smov [#allocation5]  }
   0x3   :  { %s28_s19 = sshll.u32 %s530_s18, 4  ;;  %s29_s19 = int_to_ptr.vmem [resolvable:$true] %s28_s19 }
   0x4   :  { %s452_s20 = scalar_lea.vmem %s29_s19, 1024  ;;  %p457_p1 = scmp.lt.s32.totalorder %s29_s19, %s29_s19 }
   0x5   :  { %p453_p0 = scmp.ne.s32.totalorder %s29_s19, %s452_s20  ;;  %p458_p2 = scmp.lt.s32.totalorder %s452_s20, %s452_s20 }
   0x7   :  { %p459_p3 = por %p458_p2, %p457_p1 }
   0x9   :  { %p460_p4 = pnand %p459_p3, %p453_p0 }
   0xb   :  { %463 = shalt.err (!%p460_p4)
}
   0xc   :  { %s531_s21 = smov 128   ;;  %s532_s22 = smov 8  }
   0xd   :  { %34 = dma.hbm_to_vmem [thread:$0]  %s599_s1, 1024, %s29_s19, [#allocation6], %s531_s21, %s531_s21, %s532_s22  }
   0xe   :  { %s533_s25 = smov [#allocation2]   ;;  %s534_s27 = smov [#allocation7]  }
   0xf   :  { %s19_s26 = sshll.u32 %s533_s25, 4  ;;  %s42_s28 = sshll.u32 %s534_s27, 4  ;;  %s20_s26 = int_to_ptr.vmem [resolvable:$true] %s19_s26  ;;  %s43_s28 = int_to_ptr.vmem [resolvable:$true] %s42_s28 }
  0x10   :  { %s472_s29 = scalar_lea.vmem %s20_s26, 128  ;;  %p477_p6 = scmp.lt.s32.totalorder %s20_s26, %s20_s26 }
  0x11   :  { %p473_p5 = scmp.ne.s32.totalorder %s20_s26, %s472_s29  ;;  %p478_p7 = scmp.lt.s32.totalorder %s472_s29, %s472_s29 }
  0x13   :  { %p479_p8 = por %p478_p7, %p477_p6 }
  0x15   :  { %p480_p9 = pnand %p479_p8, %p473_p5 }
  0x17   :  { %483 = shalt.err (!%p480_p9)
}
  0x18   :  { %22 = dma.hbm_to_vmem [thread:$0]  %s598_s0, 128, %s20_s26, [#allocation3]  }
  0x19   :  { %s492_s7 = scalar_lea.vmem %s43_s28, 1024  ;;  %p497_p11 = scmp.lt.s32.totalorder %s43_s28, %s43_s28 }
  0x1a   :  { %p493_p10 = scmp.ne.s32.totalorder %s43_s28, %s492_s7  ;;  %p498_p12 = scmp.lt.s32.totalorder %s492_s7, %s492_s7 }
  0x1c   :  { %p499_p13 = por %p498_p12, %p497_p11 }
  0x1e   :  { %p500_p0 = pnand %p499_p13, %p493_p10 }
  0x20   :  { %503 = shalt.err (!%p500_p0)
}
  0x21   :  { %s535_s1 = smov 256   ;;  %s536_s8 = smov 16  }
  0x22   :  { %48 = dma.hbm_to_vmem [thread:$0]  %s601_s3, 1024, %s43_s28, [#allocation6], %s535_s1, %s535_s1, %s536_s8  }
  0x23   :  { %524 = dma.done.wait [#allocation3], 128  }
  0x24   :  { %525 = vsyncadd [#allocation3], 4294967168 }
  0x25   :  { %526 = dma.done.wait [#allocation6], 2048  }
  0x26   :  { %527 = vsyncadd [#allocation6], 4294965248  ;;  %v537_v0 = vmov 0.0   ;;  %vm538_vm0 = vmmov 0   ;;  %v62_v1 = vld [vmem:[#allocation5 + $0x8] sm:$0xff]  ;;  %v61_v2 = vld [vmem:[#allocation5] sm:$0xff]  ;;  %v243_v26 = vlaneseq }
  0x27   :  { %405 = vmatprep.subr.mxu0 %v537_v0  ;;  %358 = vst [vmem:[#allocation8] sm:$0xff] %v537_v0  ;;  %409 = vmatprep.mubr.msk.f32.mxu0 %vm538_vm0, %v537_v0  ;;  %v60_v3 = vld [vmem:[#allocation2] sm:$0xff]  ;;  %vm70_vm1 = vcmask 130048   ;;  %v148_v5 = vld [vmem:[#allocation5 + $0x30] sm:$0xff]  ;;  %v147_v6 = vld [vmem:[#allocation5 + $0x28] sm:$0xff]  ;;  %vm158_vm2 = vcmask 261120  }
  0x28   :  { %412 = vmatprep.subr.mxu1 %v537_v0  ;;  %420 = vmatprep.mubr.msk.f32.mxu1 %vm538_vm0, %v537_v0  ;;  %v149_v4 = vld [vmem:[#allocation5 + $0x38] sm:$0xff]  ;;  %v146_v7 = vld [vmem:[#allocation5 + $0x20] sm:$0xff]  ;;  %v239_v9 = vld [vmem:[#allocation7 + $0x30] sm:$0xff]  ;;  %v244_v27 = vshrl.u32 %v243_v26, 7  ;;  %vm353_vm3 = vcmask 31744   ;;  %vm364_vm4 = vcmask 64544  }
  0x29   :  { %406 = vmatpush3.msra.mxu0 %v62_v1  ;;  %413 = vmatpush3.msra.mxu1 %v149_v4  ;;  %v240_v8 = vld [vmem:[#allocation7 + $0x38] sm:$0xff]  ;;  %v238_v10 = vld [vmem:[#allocation7 + $0x28] sm:$0xff]  ;;  %v237_v16 = vld [vmem:[#allocation7 + $0x20] sm:$0xff]  ;;  %vm370_vm5 = vcmask 97344   ;;  %vm372_vm6 = vcmask 105568  }
  0x2a   :  { %407 = vmatprep.subr.mxu0 %v537_v0  ;;  %414 = vmatprep.subr.mxu1 %v537_v0  ;;  %v390_v11 = vld [vmem:[%s600_s2] ss:$0 sm:$0xff]  ;;  %v235_v18 = vld [vmem:[#allocation7 + $0x10] sm:$0xff]  ;;  %v234_v19 = vld [vmem:[#allocation7 + $0x8] sm:$0xff]  ;;  %v245_v28 = vsub.s32 0, %v244_v27  ;;  %v249_v30 = vsub.s32 1, %v244_v27 }
  0x2b   :  { %408 = vmatpush3.msra.mxu0 %v61_v2  ;;  %415 = vmatpush3.msra.mxu1 %v148_v5  ;;  %v236_v17 = vld [vmem:[#allocation7 + $0x18] sm:$0xff]  ;;  %v233_v20 = vld [vmem:[#allocation7] sm:$0xff] }
  0x2c   :  { %410 = vmatmul.mubr.msk.f32.vlgmr.msra.gmra.mxu0 %vm70_vm1, %v60_v3  ;;  %416 = vmatprep.subr.mxu1 %v537_v0  ;;  %v393_v21 = vld [vmem:[%s600_s2 + $0x1] ss:$0 sm:$0xff]  ;;  %s539_s2 = smov 4  }
  0x2d   :  { %320 = vmatprep.mubr.f32.mxu0 %v537_v0  ;;  %417 = vmatpush3.msra.mxu1 %v147_v6  ;;  %v241_v29 = vld [vmem:[%s602_s4] sm:$0x3]  ;;  %s540_s4 = smov [#allocation8]  }
  0x2e   :  { %418 = vmatprep.subr.mxu1 %v537_v0  ;;  %280 = vmatprep.subr.mxu0 %v240_v8  ;;  %v246_v31 = vrot.slane %v241_v29, %v245_v28  ;;  %v250_v32 = vrot.slane %v241_v29, %v249_v30  ;;  %s380_s15 = sshll.u32 %s540_s4, 4  ;;  %s381_s15 = int_to_ptr.vmem [resolvable:$true] %s380_s15 }
  0x2f   :  { %419 = vmatpush3.msra.mxu1 %v146_v7  ;;  %281 = vmatpush1.msra.mxu0 %v239_v9  ;;  %s504_s16 = scalar_lea.vmem %s381_s15, 128  ;;  %p509_p2 = scmp.lt.s32.totalorder %s381_s15, %s381_s15 }
  0x30   :  { %282 = vmatprep.subr.mxu0 %v238_v10  ;;  %p505_p1 = scmp.ne.s32.totalorder %s381_s15, %s504_s16  ;;  %p510_p3 = scmp.lt.s32.totalorder %s504_s16, %s504_s16 }
  0x31   :  { %283 = vmatpush1.msra.mxu0 %v237_v16 }
  0x32   :  { %284 = vmatprep.subr.mxu0 %v236_v17  ;;  %p511_p4 = por %p510_p3, %p509_p2 }
  0x33   :  { %285 = vmatpush1.msra.mxu0 %v235_v18 }
  0x34   :  { %286 = vmatprep.subr.mxu0 %v234_v19  ;;  %p512_p5 = pnand %p511_p4, %p505_p1 }
  0x35   :  { %287 = vmatpush1.msra.mxu0 %v233_v20 }
  0xec   :  { %v140_v12 = vpop.f32.mrf.mxu0 }
  0xed   :  { %v141_v13 = vadd.f32 %v390_v11, %v140_v12 }
  0xee   :  { %v411_v14 = vpop.f32.mrf.mxu0 }
  0xef   :  { %v144_v15 = vmax.f32 %v141_v13, 0.0 }
  0xf1   :  { %421 = vmatmul.mubr.msk.f32.vlgmr.msra.gmra.mxu1 %vm158_vm2, %v144_v15 }
 0x1b1   :  { %v228_v22 = vpop.f32.mrf.mxu1 }
 0x1b2   :  { %v229_v23 = vadd.f32 %v393_v21, %v228_v22 }
 0x1b3   :  { %v422_v24 = vpop.f32.mrf.mxu1 }
 0x1b4   :  { %v232_v25 = vmax.f32 %v229_v23, 0.0 }
 0x1b6   :  { %395 = vmatmul.mubr.msk.f32.vlgmr.msra.gmra.mxu0 %vm158_vm2, %v232_v25 }
 0x276   :  { %v322_v33 = vpop.f32.mrf.mxu0 }
 0x277   :  { %v323_v34 = vadd.f32 %v322_v33, %v246_v31 }
 0x278   :  { %v324_v35 = vpop.f32.mrf.mxu0 }
 0x279   :  { %v337_v36 = vmul.f32 2.0, %v323_v34  ;;  %v325_v37 = vadd.f32 %v324_v35, %v250_v32  ;;  %434 = vtanh.f32 %v323_v34  ;;  %359 = vst.msk [vmem:[#allocation8] sm:$0xff] %vm353_vm3, %v323_v34  ;;  %v348_v56 = vsub.f32 0.6931472, %v323_v34 }
 0x27b   :  { %v340_v38 = vand.u32 2147483647, %v337_v36  ;;  %v327_v39 = vmax.f32 %v325_v37, -20.0  ;;  %v338_v49 = vsub.f32 0.0, %v337_v36 }
 0x27d   :  { %v341_v40 = vsub.f32 0.0, %v340_v38  ;;  %v328_v41 = vmin.f32 %v327_v39, 2.0  ;;  %v339_v52 = vmax.f32 %v338_v49, 0.0 }
 0x27f   :  { %v342_v42 = vmul.f32 1.442695, %v341_v40  ;;  %v329_v43 = vmul.f32 1.442695, %v328_v41 }
 0x281   :  { %436 = vpow2.f32 %v342_v42 }
 0x282   :  { %438 = vpow2.f32 %v329_v43 }
 0x286   :  { %v435_v44 = vpop.eup %434 }
 0x287   :  { %367 = vrot.lane.b32.xlu1 %v435_v44, %s532_s22 }
 0x28e   :  { %v437_v45 = vpop.eup %436 }
 0x28f   :  { %v439_v46 = vpop.eup %438  ;;  %v344_v47 = vadd.f32 1.0, %v437_v45 }
 0x290   :  { %v331_v48 = vadd.f32 1e-06, %v439_v46 }
 0x291   :  { %440 = vlog2.f32 %v344_v47 }
 0x292   :  { %442 = vlog2.f32 %v331_v48 }
 0x29e   :  { %v441_v50 = vpop.eup %440 }
 0x29f   :  { %v443_v51 = vpop.eup %442  ;;  %v346_v53 = vmul.f32 0.6931472, %v441_v50 }
 0x2a0   :  { %v333_v54 = vmul.f32 0.6931472, %v443_v51 }
 0x2a1   :  { %v347_v55 = vadd.f32 %v346_v53, %v339_v52 }
 0x2a2   :  { %v334_v57 = vsub.f32 0.0, %v333_v54 }
 0x2a3   :  { %v349_v58 = vsub.f32 %v348_v56, %v347_v55 }
 0x2a4   :  { %v396_v59 = vadd.f32 -0.9189385, %v334_v57 }
 0x2a5   :  { %v350_v60 = vmul.f32 2.0, %v349_v58 }
 0x2a7   :  { %v352_v61 = vsub.f32 %v396_v59, %v350_v60 }
 0x2a9   :  { %v354_v62 = vsel %vm353_vm3, %v352_v61, 0.0 }
 0x2aa   :  { %355 = vadd.xlane.f32.xlu0 %v354_v62 }
 0x2c0   :  { %361 = vrot.lane.b32.xlu0 %v331_v48, %s539_s2 }
 0x2f9   :  { %v368_v1 = vpop.permute.xlu1 %367 }
 0x333   :  { %v356_v63 = vpop.xlane.xlu0 %355 }
 0x334   :  { %v357_v2 = vsub.f32 0.0, %v356_v63 }
 0x337   :  { %v362_v0 = vpop.permute.xlu0 %361 }
 0x338   :  { %365 = vst.msk [vmem:[#allocation8] sm:$0xff] %vm364_vm4, %v362_v0 }
 0x339   :  { %371 = vst.msk [vmem:[#allocation8] sm:$0xff] %vm370_vm5, %v368_v1 }
 0x33a   :  { %373 = vst.msk [vmem:[#allocation8] sm:$0xff] %vm372_vm6, %v357_v2 }
 0x33b   :  { %515 = shalt.err (!%p512_p5)
}
 0x33c   :  { %383 = dma.vmem_to_hbm [thread:$0]  %s381_s15, 128, %s603_s5, [#allocation4]  }
 0x33d   :  { %528 = dma.done.wait [#allocation4], 128  }
 0x33e   :  { %529 = vsyncadd [#allocation4], 4294967168 }
 0x33f   :  { %387 = vsyncpa [#allocation3], 1 }
 0x340   :  { %388 = vsyncpa [#allocation6], 1 }
 0x341   :  { %389 = vsyncpa [#allocation4], 1 }

</bundles_post_ra>
